<compile_context>
chip_gen: v6e
topology: v6e:2x2x1
jax: 0.10.0
libtpu: 0.0.40
codegen_flags: <defaults>
</compile_context>

<pallas_src>
import functools

import jax
import jax.numpy as jnp
from jax.experimental import pallas as pl
from jax.experimental.pallas import tpu as pltpu


_N_TERMS = 9  # number of partial-sum rows produced per (batch, anchor)


def _round_up(v, m):
    return ((v + m - 1) // m) * m


def _yolo_loss_kernel(anchors_ref, pred_ref, tgt_ref, out_ref):
    """One (batch, anchor, cell-tile) grid step of the YOLOv3 loss partial sums.

    anchors_ref : (A, 2)        f32 SMEM  -- scaled anchors (w, h)
    pred_ref    : (D, TILE)     f32 VMEM  -- raw head output, attrs on sublanes
    tgt_ref     : (D, TILE)     f32 VMEM  -- targets, same layout
    out_ref     : (9, TILE)     f32 VMEM  -- lane-wise partial sums, accumulated
                                             across the cell-tile grid axis
      row 0: sum_obj   (x - (tx+1e-8))^2     row 5: sum_noobj BCE(conf)
      row 1: sum_obj   (y - (ty+1e-8))^2     row 6: sum_obj   sum_c BCE(cls_c)
      row 2: sum_obj   (w - tw)^2            row 7: #obj cells
      row 3: sum_obj   (h - th)^2            row 8: #noobj cells
      row 4: sum_obj   BCE(conf)
    """
    @pl.when(pl.program_id(2) == 0)
    def _init():
        out_ref[...] = jnp.zeros_like(out_ref)

    a_idx = pl.program_id(1)
    anchor_w = anchors_ref[a_idx, 0] + 1e-8
    anchor_h = anchors_ref[a_idx, 1] + 1e-8

    pred = pred_ref[...]     # (D, TILE)
    tgt = tgt_ref[...]       # (D, TILE)

    px = pred[0:1, :]
    py = pred[1:2, :]
    pw = pred[2:3, :]
    ph = pred[3:4, :]
    pconf = pred[4:5, :]
    pcls = pred[5:, :]       # (C, TILE)

    tx = tgt[0:1, :]
    ty = tgt[1:2, :]
    tw = tgt[2:3, :]
    th = tgt[3:4, :]
    tconf = tgt[4:5, :]
    tcls = tgt[5:, :]        # (C, TILE)

    # Padded lanes carry tconf == -1, so both masks are zero there.
    objf = (tconf == 1.0).astype(jnp.float32)     # (1, TILE)
    noobjf = (tconf == 0.0).astype(jnp.float32)   # (1, TILE)

    x = jax.nn.sigmoid(px)
    y = jax.nn.sigmoid(py)
    w = jnp.clip(jnp.exp(pw) * anchor_w, 1e-4, 1e4)
    h = jnp.clip(jnp.exp(ph) * anchor_h, 1e-4, 1e4)

    def bce_with_logits(z, t):
        # For t in {0, 1} this equals torch's BCELoss(sigmoid(z), t) including
        # its internal log clamp at -100 (reproduced by the min(.., 100)).
        raw = jnp.maximum(z, 0.0) - z * t + jnp.log(1.0 + jnp.exp(-jnp.abs(z)))
        return jnp.minimum(raw, 100.0)

    bce_conf = bce_with_logits(pconf, tconf)                               # (1, TILE)
    bce_cls = jnp.sum(bce_with_logits(pcls, tcls), axis=0, keepdims=True)  # (1, TILE)

    def _acc(row, val):
        out_ref[row:row + 1, :] = out_ref[row:row + 1, :] + val

    _acc(0, objf * (x - (tx + 1e-8)) ** 2)
    _acc(1, objf * (y - (ty + 1e-8)) ** 2)
    _acc(2, objf * (w - tw) ** 2)
    _acc(3, objf * (h - th) ** 2)
    _acc(4, objf * bce_conf)
    _acc(5, noobjf * bce_conf)
    _acc(6, objf * bce_cls)
    _acc(7, objf)
    _acc(8, noobjf)


@functools.partial(jax.jit, static_argnames=("num_classes", "img_size"))
def yolo_loss(predictions, targets, anchors, *, num_classes, img_size):
    """JAX/Pallas equivalent of YOLOLoss.forward.

    predictions: (B, A*(5+C), G, G)  (NCHW conv output)
    targets    : (B, A, G, G, 5+C)
    anchors    : (A, 2)              (the module's self.anchors)
    Returns (total, loss_x, loss_y, loss_w, loss_h,
             loss_conf_obj, loss_conf_noobj, loss_cls) — f32 scalars.
    """
    B = predictions.shape[0]
    G = predictions.shape[2]
    A = anchors.shape[0]
    D = 5 + num_classes
    stride = img_size / G

    if predictions.dtype != jnp.float32:
        predictions = predictions.astype(jnp.float32)
    if targets.dtype != jnp.float32:
        targets = targets.astype(jnp.float32)

    n_cells = G * G
    tile = min(1024, _round_up(n_cells, 128))     # lane-axis tile width
    n_pad = _round_up(n_cells, tile)
    n_tiles = n_pad // tile

    # NCHW head output -> (B, A, D, G*G): a pure reshape (no transpose/copy).
    pred4 = predictions.reshape(B, A, D, n_cells)
    # Targets need one transpose to put the attribute axis on sublanes.
    tgt4 = targets.transpose(0, 1, 4, 2, 3).reshape(B, A, D, n_cells)

    if n_pad != n_cells:
        pad = n_pad - n_cells
        pred4 = jnp.pad(pred4, ((0, 0), (0, 0), (0, 0), (0, pad)))
        # Pad targets with -1 so tconf is neither 0 nor 1 -> both masks are 0.
        tgt4 = jnp.pad(tgt4, ((0, 0), (0, 0), (0, 0), (0, pad)),
                       constant_values=-1.0)

    scaled_anchors = anchors.astype(jnp.float32) / stride      # (A, 2)

    partial = pl.pallas_call(
        _yolo_loss_kernel,
        out_shape=jax.ShapeDtypeStruct((B, A, _N_TERMS, tile), jnp.float32),
        grid=(B, A, n_tiles),
        in_specs=[
            pl.BlockSpec((A, 2), lambda b, a, t: (0, 0),
                         memory_space=pltpu.MemorySpace.SMEM),
            pl.BlockSpec((None, None, D, tile), lambda b, a, t: (b, a, 0, t)),
            pl.BlockSpec((None, None, D, tile), lambda b, a, t: (b, a, 0, t)),
        ],
        out_specs=pl.BlockSpec((None, None, _N_TERMS, tile),
                               lambda b, a, t: (b, a, 0, 0)),
        compiler_params=pltpu.CompilerParams(
            dimension_semantics=("parallel", "parallel", "arbitrary")),
    )(scaled_anchors, pred4, tgt4)

    # Cheap final reduction + normalisation in plain JAX.
    sums = jnp.sum(partial, axis=(0, 1, 3))      # (9,)

    lambda_coord = 5.0
    lambda_noobj = 0.5

    n_obj = sums[7]
    n_noobj = sums[8]
    n_cls = n_obj * num_classes

    loss_x = lambda_coord * sums[0] / n_obj
    loss_y = lambda_coord * sums[1] / n_obj
    loss_w = sums[2] / n_obj
    loss_h = sums[3] / n_obj
    loss_conf_obj = sums[4] / n_obj
    loss_conf_noobj = lambda_noobj * sums[5] / n_noobj
    loss_cls = sums[6] / n_cls

    total = (
        loss_x + loss_y + loss_w + loss_h
        + loss_conf_obj + loss_conf_noobj + loss_cls
    )
    # reference: NaN total -> 0.0
    total = jnp.where(jnp.isnan(total), jnp.float32(0.0), total)

    return (total, loss_x, loss_y, loss_w, loss_h,
            loss_conf_obj, loss_conf_noobj, loss_cls)


if __name__ == "__main__":
    # Small deterministic setup consistent with the module:
    #   batch=2, num_anchors=3, num_classes=3, grid=16, img_size=64.
    B, A, C, G = 2, 3, 3, 16
    D = 5 + C
    IMG_SIZE = 64.0

    # Deterministic "module parameters" (anchors) — shapes as in __init__.
    anchors = jnp.array(
        [[10.0, 13.0], [16.0, 30.0], [33.0, 23.0]], dtype=jnp.float32
    )

    key = jax.random.PRNGKey(0)
    k_pred, k_obj, k_xy, k_wh, k_cls = jax.random.split(key, 5)

    # Predictions: raw conv-head output, NCHW.
    predictions = 0.5 * jax.random.normal(k_pred, (B, A * D, G, G), jnp.float32)

    # Targets: sparse objects (~5% of cells), zeros elsewhere.
    obj = (jax.random.uniform(k_obj, (B, A, G, G)) < 0.05).astype(jnp.float32)
    obj = obj.at[0, 0, 3, 5].set(1.0)  # guarantee at least one object
    txy = jax.random.uniform(k_xy, (B, A, G, G, 2), minval=0.0, maxval=1.0)
    twh = jax.random.uniform(k_wh, (B, A, G, G, 2), minval=0.5, maxval=4.0)
    cls_idx = jax.random.randint(k_cls, (B, A, G, G), 0, C)
    tcls = jax.nn.one_hot(cls_idx, C, dtype=jnp.float32)
    targets = jnp.concatenate([txy, twh, obj[..., None], tcls], axis=-1)
    targets = targets * obj[..., None]  # non-object cells are all-zero

    losses = yolo_loss(
        predictions, targets, anchors, num_classes=C, img_size=IMG_SIZE
    )
    losses = jax.block_until_ready(losses)

    total = float(losses[0])
    assert total == total, "total loss is NaN"
    print("KERNEL_OK")
</pallas_src>

<mosaic_0001>
module attributes {stable_mosaic.version = 11 : i64} {
  func.func @_yolo_loss_kernel(%arg0: i32, %arg1: i32, %arg2: i32, %arg3: memref<3x2xf32, #tpu.memory_space<smem>>, %arg4: memref<1x1x8x256xf32, #tpu.memory_space<vmem>>, %arg5: memref<1x1x8x256xf32, #tpu.memory_space<vmem>>, %arg6: memref<1x1x9x256xf32, #tpu.memory_space<vmem>>) attributes {dimension_semantics = [#tpu.dimension_semantics<parallel>, #tpu.dimension_semantics<parallel>, #tpu.dimension_semantics<arbitrary>], iteration_bounds = array<i64: 2, 3, 1>, scalar_prefetch = 0 : i64, scratch_operands = 0 : i64, tpu.core_type = #tpu.core_type<tc>, window_params = [{transform_indices = @transform_0, window_bounds = array<i64: 3, 2>}, {transform_indices = @transform_1, window_bounds = array<i64: 1, 1, 8, 256>}, {transform_indices = @transform_2, window_bounds = array<i64: 1, 1, 8, 256>}, {transform_indices = @transform_3, window_bounds = array<i64: 1, 1, 9, 256>}]} {
    %c0_i32 = arith.constant 0 : i32
    %0 = arith.cmpi eq, %arg2, %c0_i32 : i32
    %1 = arith.extui %0 : i1 to i32
    %c0_i32_0 = arith.constant 0 : i32
    %2 = arith.cmpi ne, %1, %c0_i32_0 : i32
    scf.if %2 {
      %cst_94 = arith.constant 0.000000e+00 : f32
      %160 = vector.broadcast %cst_94 : f32 to vector<9x256xf32>
      %c0_95 = arith.constant 0 : index
      %c0_96 = arith.constant 0 : index
      %c0_97 = arith.constant 0 : index
      %c0_98 = arith.constant 0 : index
      %161 = vector.load %arg6[%c0_95, %c0_96, %c0_97, %c0_98] : memref<1x1x9x256xf32, #tpu.memory_space<vmem>>, vector<1x1x9x256xf32>
      %162 = vector.shape_cast %161 : vector<1x1x9x256xf32> to vector<9x256xf32>
      %163 = vector.shape_cast %160 : vector<9x256xf32> to vector<1x1x9x256xf32>
      tpu.vector_store %arg6[%c0_95, %c0_96, %c0_97, %c0_98], %163 {strides = array<i32>} : memref<1x1x9x256xf32, #tpu.memory_space<vmem>>, vector<1x1x9x256xf32>,
    } else {
    }
    %3 = arith.index_cast %arg1 : i32 to index
    %c0 = arith.constant 0 : index
    %4 = memref.load %arg3[%3, %c0] : memref<3x2xf32, #tpu.memory_space<smem>>
    %cst = arith.constant 9.99999993E-9 : f32
    %5 = arith.addf %4, %cst : f32
    %6 = arith.index_cast %arg1 : i32 to index
    %c1 = arith.constant 1 : index
    %7 = memref.load %arg3[%6, %c1] : memref<3x2xf32, #tpu.memory_space<smem>>
    %cst_1 = arith.constant 9.99999993E-9 : f32
    %8 = arith.addf %7, %cst_1 : f32
    %c0_2 = arith.constant 0 : index
    %c0_3 = arith.constant 0 : index
    %c0_4 = arith.constant 0 : index
    %c0_5 = arith.constant 0 : index
    %9 = vector.load %arg4[%c0_2, %c0_3, %c0_4, %c0_5] : memref<1x1x8x256xf32, #tpu.memory_space<vmem>>, vector<1x1x8x256xf32>
    %10 = vector.shape_cast %9 : vector<1x1x8x256xf32> to vector<8x256xf32>
    %c0_6 = arith.constant 0 : index
    %c0_7 = arith.constant 0 : index
    %c0_8 = arith.constant 0 : index
    %c0_9 = arith.constant 0 : index
    %11 = vector.load %arg5[%c0_6, %c0_7, %c0_8, %c0_9] : memref<1x1x8x256xf32, #tpu.memory_space<vmem>>, vector<1x1x8x256xf32>
    %12 = vector.shape_cast %11 : vector<1x1x8x256xf32> to vector<8x256xf32>
    %13 = vector.extract_strided_slice %10 {offsets = [0, 0], sizes = [1, 256], strides = [1, 1]} : vector<8x256xf32> to vector<1x256xf32>
    %14 = vector.extract_strided_slice %10 {offsets = [1, 0], sizes = [1, 256], strides = [1, 1]} : vector<8x256xf32> to vector<1x256xf32>
    %15 = vector.extract_strided_slice %10 {offsets = [2, 0], sizes = [1, 256], strides = [1, 1]} : vector<8x256xf32> to vector<1x256xf32>
    %16 = vector.extract_strided_slice %10 {offsets = [3, 0], sizes = [1, 256], strides = [1, 1]} : vector<8x256xf32> to vector<1x256xf32>
    %17 = vector.extract_strided_slice %10 {offsets = [4, 0], sizes = [1, 256], strides = [1, 1]} : vector<8x256xf32> to vector<1x256xf32>
    %18 = vector.extract_strided_slice %10 {offsets = [5, 0], sizes = [3, 256], strides = [1, 1]} : vector<8x256xf32> to vector<3x256xf32>
    %19 = vector.extract_strided_slice %12 {offsets = [0, 0], sizes = [1, 256], strides = [1, 1]} : vector<8x256xf32> to vector<1x256xf32>
    %20 = vector.extract_strided_slice %12 {offsets = [1, 0], sizes = [1, 256], strides = [1, 1]} : vector<8x256xf32> to vector<1x256xf32>
    %21 = vector.extract_strided_slice %12 {offsets = [2, 0], sizes = [1, 256], strides = [1, 1]} : vector<8x256xf32> to vector<1x256xf32>
    %22 = vector.extract_strided_slice %12 {offsets = [3, 0], sizes = [1, 256], strides = [1, 1]} : vector<8x256xf32> to vector<1x256xf32>
    %23 = vector.extract_strided_slice %12 {offsets = [4, 0], sizes = [1, 256], strides = [1, 1]} : vector<8x256xf32> to vector<1x256xf32>
    %24 = vector.extract_strided_slice %12 {offsets = [5, 0], sizes = [3, 256], strides = [1, 1]} : vector<8x256xf32> to vector<3x256xf32>
    %cst_10 = arith.constant 1.000000e+00 : f32
    %25 = vector.broadcast %cst_10 : f32 to vector<1x256xf32>
    %26 = arith.cmpf oeq, %23, %25 : vector<1x256xf32>
    %27 = arith.extui %26 : vector<1x256xi1> to vector<1x256xi32>
    %28 = arith.sitofp %27 : vector<1x256xi32> to vector<1x256xf32>
    %cst_11 = arith.constant 0.000000e+00 : f32
    %29 = vector.broadcast %cst_11 : f32 to vector<1x256xf32>
    %30 = arith.cmpf oeq, %23, %29 : vector<1x256xf32>
    %31 = arith.extui %30 : vector<1x256xi1> to vector<1x256xi32>
    %32 = arith.sitofp %31 : vector<1x256xi32> to vector<1x256xf32>
    %33 = arith.negf %13 : vector<1x256xf32>
    %34 = math.exp %33 : vector<1x256xf32>
    %cst_12 = arith.constant 1.000000e+00 : f32
    %35 = vector.broadcast %cst_12 : f32 to vector<1x256xf32>
    %36 = arith.addf %35, %34 : vector<1x256xf32>
    %37 = arith.divf %35, %36 : vector<1x256xf32>
    %38 = arith.negf %14 : vector<1x256xf32>
    %39 = math.exp %38 : vector<1x256xf32>
    %cst_13 = arith.constant 1.000000e+00 : f32
    %40 = vector.broadcast %cst_13 : f32 to vector<1x256xf32>
    %41 = arith.addf %40, %39 : vector<1x256xf32>
    %42 = arith.divf %40, %41 : vector<1x256xf32>
    %43 = math.exp %15 : vector<1x256xf32>
    %44 = vector.broadcast %5 : f32 to vector<1x256xf32>
    %45 = arith.mulf %43, %44 : vector<1x256xf32>
    %cst_14 = arith.constant 9.99999974E-5 : f32
    %cst_15 = arith.constant 1.000000e+04 : f32
    %46 = vector.broadcast %cst_14 : f32 to vector<1x256xf32>
    %47 = arith.maximumf %46, %45 : vector<1x256xf32>
    %48 = vector.broadcast %cst_15 : f32 to vector<1x256xf32>
    %49 = arith.minimumf %48, %47 : vector<1x256xf32>
    %50 = math.exp %16 : vector<1x256xf32>
    %51 = vector.broadcast %8 : f32 to vector<1x256xf32>
    %52 = arith.mulf %50, %51 : vector<1x256xf32>
    %cst_16 = arith.constant 9.99999974E-5 : f32
    %cst_17 = arith.constant 1.000000e+04 : f32
    %53 = vector.broadcast %cst_16 : f32 to vector<1x256xf32>
    %54 = arith.maximumf %53, %52 : vector<1x256xf32>
    %55 = vector.broadcast %cst_17 : f32 to vector<1x256xf32>
    %56 = arith.minimumf %55, %54 : vector<1x256xf32>
    %cst_18 = arith.constant 0.000000e+00 : f32
    %57 = vector.broadcast %cst_18 : f32 to vector<1x256xf32>
    %58 = arith.maximumf %17, %57 : vector<1x256xf32>
    %59 = arith.mulf %17, %23 : vector<1x256xf32>
    %60 = arith.subf %58, %59 : vector<1x256xf32>
    %61 = math.absf %17 : vector<1x256xf32>
    %cst_19 = arith.constant 0.000000e+00 : f32
    %62 = vector.broadcast %cst_19 : f32 to vector<1x256xf32>
    %63 = arith.subf %62, %61 : vector<1x256xf32>
    %64 = math.exp %63 : vector<1x256xf32>
    %cst_20 = arith.constant 1.000000e+00 : f32
    %65 = vector.broadcast %cst_20 : f32 to vector<1x256xf32>
    %66 = arith.addf %65, %64 : vector<1x256xf32>
    %67 = math.log %66 : vector<1x256xf32>
    %68 = arith.addf %60, %67 : vector<1x256xf32>
    %cst_21 = arith.constant 1.000000e+02 : f32
    %69 = vector.broadcast %cst_21 : f32 to vector<1x256xf32>
    %70 = arith.minimumf %68, %69 : vector<1x256xf32>
    %cst_22 = arith.constant 0.000000e+00 : f32
    %71 = vector.broadcast %cst_22 : f32 to vector<3x256xf32>
    %72 = arith.maximumf %18, %71 : vector<3x256xf32>
    %73 = arith.mulf %18, %24 : vector<3x256xf32>
    %74 = arith.subf %72, %73 : vector<3x256xf32>
    %75 = math.absf %18 : vector<3x256xf32>
    %cst_23 = arith.constant 0.000000e+00 : f32
    %76 = vector.broadcast %cst_23 : f32 to vector<3x256xf32>
    %77 = arith.subf %76, %75 : vector<3x256xf32>
    %78 = math.exp %77 : vector<3x256xf32>
    %cst_24 = arith.constant 1.000000e+00 : f32
    %79 = vector.broadcast %cst_24 : f32 to vector<3x256xf32>
    %80 = arith.addf %79, %78 : vector<3x256xf32>
    %81 = math.log %80 : vector<3x256xf32>
    %82 = arith.addf %74, %81 : vector<3x256xf32>
    %cst_25 = arith.constant 1.000000e+02 : f32
    %83 = vector.broadcast %cst_25 : f32 to vector<3x256xf32>
    %84 = arith.minimumf %82, %83 : vector<3x256xf32>
    %cst_26 = arith.constant dense<0.000000e+00> : vector<256xf32>
    %85 = vector.multi_reduction <add>, %84, %cst_26 [0] : vector<3x256xf32> to vector<256xf32>
    %86 = vector.shape_cast %85 : vector<256xf32> to vector<1x256xf32>
    %cst_27 = arith.constant 9.99999993E-9 : f32
    %87 = vector.broadcast %cst_27 : f32 to vector<1x256xf32>
    %88 = arith.addf %19, %87 : vector<1x256xf32>
    %89 = arith.subf %37, %88 : vector<1x256xf32>
    %90 = arith.mulf %89, %89 : vector<1x256xf32>
    %91 = arith.mulf %28, %90 : vector<1x256xf32>
    %c0_28 = arith.constant 0 : index
    %c0_29 = arith.constant 0 : index
    %c0_30 = arith.constant 0 : index
    %c0_31 = arith.constant 0 : index
    %92 = vector.load %arg6[%c0_28, %c0_29, %c0_30, %c0_31] : memref<1x1x9x256xf32, #tpu.memory_space<vmem>>, vector<1x1x1x256xf32>
    %93 = vector.shape_cast %92 : vector<1x1x1x256xf32> to vector<1x256xf32>
    %94 = arith.addf %93, %91 : vector<1x256xf32>
    %c0_32 = arith.constant 0 : index
    %c0_33 = arith.constant 0 : index
    %c0_34 = arith.constant 0 : index
    %c0_35 = arith.constant 0 : index
    %95 = vector.load %arg6[%c0_32, %c0_33, %c0_34, %c0_35] : memref<1x1x9x256xf32, #tpu.memory_space<vmem>>, vector<1x1x1x256xf32>
    %96 = vector.shape_cast %95 : vector<1x1x1x256xf32> to vector<1x256xf32>
    %97 = vector.shape_cast %94 : vector<1x256xf32> to vector<1x1x1x256xf32>
    tpu.vector_store %arg6[%c0_32, %c0_33, %c0_34, %c0_35], %97 {strides = array<i32>} : memref<1x1x9x256xf32, #tpu.memory_space<vmem>>, vector<1x1x1x256xf32>,
    %cst_36 = arith.constant 9.99999993E-9 : f32
    %98 = vector.broadcast %cst_36 : f32 to vector<1x256xf32>
    %99 = arith.addf %20, %98 : vector<1x256xf32>
    %100 = arith.subf %42, %99 : vector<1x256xf32>
    %101 = arith.mulf %100, %100 : vector<1x256xf32>
    %102 = arith.mulf %28, %101 : vector<1x256xf32>
    %c0_37 = arith.constant 0 : index
    %c0_38 = arith.constant 0 : index
    %c1_39 = arith.constant 1 : index
    %c0_40 = arith.constant 0 : index
    %103 = vector.load %arg6[%c0_37, %c0_38, %c1_39, %c0_40] : memref<1x1x9x256xf32, #tpu.memory_space<vmem>>, vector<1x1x1x256xf32>
    %104 = vector.shape_cast %103 : vector<1x1x1x256xf32> to vector<1x256xf32>
    %105 = arith.addf %104, %102 : vector<1x256xf32>
    %c0_41 = arith.constant 0 : index
    %c0_42 = arith.constant 0 : index
    %c1_43 = arith.constant 1 : index
    %c0_44 = arith.constant 0 : index
    %106 = vector.load %arg6[%c0_41, %c0_42, %c1_43, %c0_44] : memref<1x1x9x256xf32, #tpu.memory_space<vmem>>, vector<1x1x1x256xf32>
    %107 = vector.shape_cast %106 : vector<1x1x1x256xf32> to vector<1x256xf32>
    %108 = vector.shape_cast %105 : vector<1x256xf32> to vector<1x1x1x256xf32>
    tpu.vector_store %arg6[%c0_41, %c0_42, %c1_43, %c0_44], %108 {strides = array<i32>} : memref<1x1x9x256xf32, #tpu.memory_space<vmem>>, vector<1x1x1x256xf32>,
    %109 = arith.subf %49, %21 : vector<1x256xf32>
    %110 = arith.mulf %109, %109 : vector<1x256xf32>
    %111 = arith.mulf %28, %110 : vector<1x256xf32>
    %c0_45 = arith.constant 0 : index
    %c0_46 = arith.constant 0 : index
    %c2 = arith.constant 2 : index
    %c0_47 = arith.constant 0 : index
    %112 = vector.load %arg6[%c0_45, %c0_46, %c2, %c0_47] : memref<1x1x9x256xf32, #tpu.memory_space<vmem>>, vector<1x1x1x256xf32>
    %113 = vector.shape_cast %112 : vector<1x1x1x256xf32> to vector<1x256xf32>
    %114 = arith.addf %113, %111 : vector<1x256xf32>
    %c0_48 = arith.constant 0 : index
    %c0_49 = arith.constant 0 : index
    %c2_50 = arith.constant 2 : index
    %c0_51 = arith.constant 0 : index
    %115 = vector.load %arg6[%c0_48, %c0_49, %c2_50, %c0_51] : memref<1x1x9x256xf32, #tpu.memory_space<vmem>>, vector<1x1x1x256xf32>
    %116 = vector.shape_cast %115 : vector<1x1x1x256xf32> to vector<1x256xf32>
    %117 = vector.shape_cast %114 : vector<1x256xf32> to vector<1x1x1x256xf32>
    tpu.vector_store %arg6[%c0_48, %c0_49, %c2_50, %c0_51], %117 {strides = array<i32>} : memref<1x1x9x256xf32, #tpu.memory_space<vmem>>, vector<1x1x1x256xf32>,
    %118 = arith.subf %56, %22 : vector<1x256xf32>
    %119 = arith.mulf %118, %118 : vector<1x256xf32>
    %120 = arith.mulf %28, %119 : vector<1x256xf32>
    %c0_52 = arith.constant 0 : index
    %c0_53 = arith.constant 0 : index
    %c3 = arith.constant 3 : index
    %c0_54 = arith.constant 0 : index
    %121 = vector.load %arg6[%c0_52, %c0_53, %c3, %c0_54] : memref<1x1x9x256xf32, #tpu.memory_space<vmem>>, vector<1x1x1x256xf32>
    %122 = vector.shape_cast %121 : vector<1x1x1x256xf32> to vector<1x256xf32>
    %123 = arith.addf %122, %120 : vector<1x256xf32>
    %c0_55 = arith.constant 0 : index
    %c0_56 = arith.constant 0 : index
    %c3_57 = arith.constant 3 : index
    %c0_58 = arith.constant 0 : index
    %124 = vector.load %arg6[%c0_55, %c0_56, %c3_57, %c0_58] : memref<1x1x9x256xf32, #tpu.memory_space<vmem>>, vector<1x1x1x256xf32>
    %125 = vector.shape_cast %124 : vector<1x1x1x256xf32> to vector<1x256xf32>
    %126 = vector.shape_cast %123 : vector<1x256xf32> to vector<1x1x1x256xf32>
    tpu.vector_store %arg6[%c0_55, %c0_56, %c3_57, %c0_58], %126 {strides = array<i32>} : memref<1x1x9x256xf32, #tpu.memory_space<vmem>>, vector<1x1x1x256xf32>,
    %127 = arith.mulf %28, %70 : vector<1x256xf32>
    %c0_59 = arith.constant 0 : index
    %c0_60 = arith.constant 0 : index
    %c4 = arith.constant 4 : index
    %c0_61 = arith.constant 0 : index
    %128 = vector.load %arg6[%c0_59, %c0_60, %c4, %c0_61] : memref<1x1x9x256xf32, #tpu.memory_space<vmem>>, vector<1x1x1x256xf32>
    %129 = vector.shape_cast %128 : vector<1x1x1x256xf32> to vector<1x256xf32>
    %130 = arith.addf %129, %127 : vector<1x256xf32>
    %c0_62 = arith.constant 0 : index
    %c0_63 = arith.constant 0 : index
    %c4_64 = arith.constant 4 : index
    %c0_65 = arith.constant 0 : index
    %131 = vector.load %arg6[%c0_62, %c0_63, %c4_64, %c0_65] : memref<1x1x9x256xf32, #tpu.memory_space<vmem>>, vector<1x1x1x256xf32>
    %132 = vector.shape_cast %131 : vector<1x1x1x256xf32> to vector<1x256xf32>
    %133 = vector.shape_cast %130 : vector<1x256xf32> to vector<1x1x1x256xf32>
    tpu.vector_store %arg6[%c0_62, %c0_63, %c4_64, %c0_65], %133 {strides = array<i32>} : memref<1x1x9x256xf32, #tpu.memory_space<vmem>>, vector<1x1x1x256xf32>,
    %134 = arith.mulf %32, %70 : vector<1x256xf32>
    %c0_66 = arith.constant 0 : index
    %c0_67 = arith.constant 0 : index
    %c5 = arith.constant 5 : index
    %c0_68 = arith.constant 0 : index
    %135 = vector.load %arg6[%c0_66, %c0_67, %c5, %c0_68] : memref<1x1x9x256xf32, #tpu.memory_space<vmem>>, vector<1x1x1x256xf32>
    %136 = vector.shape_cast %135 : vector<1x1x1x256xf32> to vector<1x256xf32>
    %137 = arith.addf %136, %134 : vector<1x256xf32>
    %c0_69 = arith.constant 0 : index
    %c0_70 = arith.constant 0 : index
    %c5_71 = arith.constant 5 : index
    %c0_72 = arith.constant 0 : index
    %138 = vector.load %arg6[%c0_69, %c0_70, %c5_71, %c0_72] : memref<1x1x9x256xf32, #tpu.memory_space<vmem>>, vector<1x1x1x256xf32>
    %139 = vector.shape_cast %138 : vector<1x1x1x256xf32> to vector<1x256xf32>
    %140 = vector.shape_cast %137 : vector<1x256xf32> to vector<1x1x1x256xf32>
    tpu.vector_store %arg6[%c0_69, %c0_70, %c5_71, %c0_72], %140 {strides = array<i32>} : memref<1x1x9x256xf32, #tpu.memory_space<vmem>>, vector<1x1x1x256xf32>,
    %141 = arith.mulf %28, %86 : vector<1x256xf32>
    %c0_73 = arith.constant 0 : index
    %c0_74 = arith.constant 0 : index
    %c6 = arith.constant 6 : index
    %c0_75 = arith.constant 0 : index
    %142 = vector.load %arg6[%c0_73, %c0_74, %c6, %c0_75] : memref<1x1x9x256xf32, #tpu.memory_space<vmem>>, vector<1x1x1x256xf32>
    %143 = vector.shape_cast %142 : vector<1x1x1x256xf32> to vector<1x256xf32>
    %144 = arith.addf %143, %141 : vector<1x256xf32>
    %c0_76 = arith.constant 0 : index
    %c0_77 = arith.constant 0 : index
    %c6_78 = arith.constant 6 : index
    %c0_79 = arith.constant 0 : index
    %145 = vector.load %arg6[%c0_76, %c0_77, %c6_78, %c0_79] : memref<1x1x9x256xf32, #tpu.memory_space<vmem>>, vector<1x1x1x256xf32>
    %146 = vector.shape_cast %145 : vector<1x1x1x256xf32> to vector<1x256xf32>
    %147 = vector.shape_cast %144 : vector<1x256xf32> to vector<1x1x1x256xf32>
    tpu.vector_store %arg6[%c0_76, %c0_77, %c6_78, %c0_79], %147 {strides = array<i32>} : memref<1x1x9x256xf32, #tpu.memory_space<vmem>>, vector<1x1x1x256xf32>,
    %c0_80 = arith.constant 0 : index
    %c0_81 = arith.constant 0 : index
    %c7 = arith.constant 7 : index
    %c0_82 = arith.constant 0 : index
    %148 = vector.load %arg6[%c0_80, %c0_81, %c7, %c0_82] : memref<1x1x9x256xf32, #tpu.memory_space<vmem>>, vector<1x1x1x256xf32>
    %149 = vector.shape_cast %148 : vector<1x1x1x256xf32> to vector<1x256xf32>
    %150 = arith.addf %149, %28 : vector<1x256xf32>
    %c0_83 = arith.constant 0 : index
    %c0_84 = arith.constant 0 : index
    %c7_85 = arith.constant 7 : index
    %c0_86 = arith.constant 0 : index
    %151 = vector.load %arg6[%c0_83, %c0_84, %c7_85, %c0_86] : memref<1x1x9x256xf32, #tpu.memory_space<vmem>>, vector<1x1x1x256xf32>
    %152 = vector.shape_cast %151 : vector<1x1x1x256xf32> to vector<1x256xf32>
    %153 = vector.shape_cast %150 : vector<1x256xf32> to vector<1x1x1x256xf32>
    tpu.vector_store %arg6[%c0_83, %c0_84, %c7_85, %c0_86], %153 {strides = array<i32>} : memref<1x1x9x256xf32, #tpu.memory_space<vmem>>, vector<1x1x1x256xf32>,
    %c0_87 = arith.constant 0 : index
    %c0_88 = arith.constant 0 : index
    %c8 = arith.constant 8 : index
    %c0_89 = arith.constant 0 : index
    %154 = vector.load %arg6[%c0_87, %c0_88, %c8, %c0_89] : memref<1x1x9x256xf32, #tpu.memory_space<vmem>>, vector<1x1x1x256xf32>
    %155 = vector.shape_cast %154 : vector<1x1x1x256xf32> to vector<1x256xf32>
    %156 = arith.addf %155, %32 : vector<1x256xf32>
    %c0_90 = arith.constant 0 : index
    %c0_91 = arith.constant 0 : index
    %c8_92 = arith.constant 8 : index
    %c0_93 = arith.constant 0 : index
    %157 = vector.load %arg6[%c0_90, %c0_91, %c8_92, %c0_93] : memref<1x1x9x256xf32, #tpu.memory_space<vmem>>, vector<1x1x1x256xf32>
    %158 = vector.shape_cast %157 : vector<1x1x1x256xf32> to vector<1x256xf32>
    %159 = vector.shape_cast %156 : vector<1x256xf32> to vector<1x1x1x256xf32>
    tpu.vector_store %arg6[%c0_90, %c0_91, %c8_92, %c0_93], %159 {strides = array<i32>} : memref<1x1x9x256xf32, #tpu.memory_space<vmem>>, vector<1x1x1x256xf32>,
    return
  }
  func.func @transform_0(%arg0: i32, %arg1: i32, %arg2: i32) -> (i32, i32) {
    %c0_i32 = arith.constant 0 : i32
    %c0_i32_0 = arith.constant 0 : i32
    %c0_i32_1 = arith.constant 0 : i32
    return %c0_i32, %c0_i32_0 : i32, i32
  }
  func.func @transform_1(%arg0: i32, %arg1: i32, %arg2: i32) -> (i32, i32, i32, i32) {
    %c0_i32 = arith.constant 0 : i32
    %c0_i32_0 = arith.constant 0 : i32
    return %arg0, %arg1, %c0_i32, %arg2 : i32, i32, i32, i32
  }
  func.func @transform_2(%arg0: i32, %arg1: i32, %arg2: i32) -> (i32, i32, i32, i32) {
    %c0_i32 = arith.constant 0 : i32
    %c0_i32_0 = arith.constant 0 : i32
    return %arg0, %arg1, %c0_i32, %arg2 : i32, i32, i32, i32
  }
  func.func @transform_3(%arg0: i32, %arg1: i32, %arg2: i32) -> (i32, i32, i32, i32) {
    %c0_i32 = arith.constant 0 : i32
    %c0_i32_0 = arith.constant 0 : i32
    %c0_i32_1 = arith.constant 0 : i32
    return %arg0, %arg1, %c0_i32, %c0_i32_0 : i32, i32, i32, i32
  }
}

</mosaic_0001>

<bundles_post_ra>
// kernel: yolo_loss.1
= control target key start
LH: loop header
LB: loop body
LE: loop exit
PB: predicated region body
PF: predicated region fallthrough
CT: control target
= control target key end

     0   :  { %8 = vsyncpa [#allocation3], 0  ;;  %s992_s12 = smov 0   ;;  %s994_s13 = smov 0   ;;  %s1205_s0 = inlined_call_operand.vmem [shape: f32[3,2], index: 0, kind: input, shape index: {}]   ;;  %s1206_s1 = inlined_call_operand.vmem [shape: f32[2,3,8,256], index: 1, kind: input, shape index: {}]   ;;  %s1207_s2 = inlined_call_operand.vmem [shape: f32[2,3,8,256], index: 2, kind: input, shape index: {}]   ;;  %s1208_s3 = inlined_call_operand.vmem [shape: f32[2,3,9,256], index: 3, kind: output, shape index: {}]  }
   0x1   :  { %s996_s14 = smov 0   ;;  %s998_s15 = smov 0  }
   0x2   :  { %s1000_s16 = smov 0  }
   0x3 LB: > { %s797_s17 = sadd.s32 4294967295, %s967_s16   ;;  %s29_s18 = sadd.s32 1, %s959_s14  ;;  %s967_s16 = sphi %s1000_s16, %s14_s16   ;;  %s963_s15 = sphi %s998_s15, %s1216_s15   ;;  %s959_s14 = sphi %s996_s14, %s1215_s14   ;;  %s955_s13 = sphi %s994_s13, %s1214_s13   ;;  %s951_s12 = sphi %s992_s12, %s1213_s12  }
   0x4   : > { %p31_p0 = scmp.ge.s32.totalorder %s29_s18, 3  ;;  %s33_s19 = sadd.s32 1, %s963_s15 }
   0x5   : > { %p799_p1 = scmp.ge.s32.totalorder %s967_s16, 1  ;;  %p147_p2 = scmp.lt.s32.totalorder %s967_s16, 7 }
   0x6   : > { %s1218_s18 = smov (%p31_p0, %s29_s18), 0  ;;  %s1220_s19 = smov (!%p31_p0, %s33_s19), %s963_s15 }
   0x7   : > { %p1025_p3 = pnand %p799_p1, %p147_p2  ;;  %p35_p4 = scmp.ge.s32.totalorder %s1220_s19, 2 }
   0x8   : > { %p1029_p5 = scmp.eq.s32.totalorder %s797_s17, 0  ;;  %s160_s24 = sshll.u32 %s1205_s0, 4  ;;  %s161_s24 = int_to_ptr.vmem [resolvable:$true] %s160_s24 }
   0x9   : > { %p841_p6 = pneg %p1025_p3  ;;  %s1222_s19 = smov (%p35_p4, %s1220_s19), 0 }
   0xa   : > { %s910_s25 = scalar_lea.vmem %s161_s24, 64  ;;  %p918_p12 = scmp.lt.s32.totalorder %s161_s24, %s161_s24 }
   0xb   : > { %p842_p7 = pnand %p1029_p5, %p841_p6  ;;  %p911_p8 = scmp.ne.s32.totalorder %s161_s24, %s910_s25 }
   0xc   : > { %p919_p13 = scmp.lt.s32.totalorder %s910_s25, %s910_s25 }
   0xd   : > { %p912_p9 = pneg %p842_p7 }
   0xe   : > { %p920_p0 = por %p919_p13, %p918_p12 }
   0xf   : > { %p913_p10 = pnand %p912_p9, %p911_p8 }
  0x11   : > { %p914_p11 = pneg %p913_p10 }
  0x13   : > { %p921_p1 = pnand %p920_p0, %p914_p11 }
  0x15   : > { %924 = shalt.err (!%p921_p1)
}
  0x16   : > { %s969_s26 = smov [#allocation2]   ;;  %207 = sbr.rel (%p1025_p3) target bundleno = 115 (0x73), region = 32 }
  0x17   : > { %844 = dma.vmem_to_smem (!%p842_p7), %s161_s24, 64, %s969_s26, [#allocation3]  }
  0x1b   : > { %946 = dma.done.wait (%p1029_p5), [#allocation3], 64  }
  0x1c   : > { %948 = vsyncadd (%p1029_p5), [#allocation3], 4294967232 }
  0x1d   : > { %213 = sfence }
  0x1e   : > { %p258_p2 = scmp.lt.s32.totalorder %s955_s13, 1  ;;  %p260_p4 = scmp.lt.s32.totalorder %s951_s12, 2  ;;  %v970_v0 = vmov 1966171168   ;;  %v420_v2 = vlaneseq  ;;  %v971_v3 = vmov 0.0   ;;  %vm384_vm5 = vcmask 1042432  }
  0x1f   : > { %v418_v1 = vunpack.c.l.s4 %v970_v0  ;;  %s810_s7 = sshll.u32 %s951_s12, 7 }
  0x20   : > { %s1224_s13 = smov (!%p258_p2, %s955_s13), 1  ;;  %v421_v8 = vshrl.u32 %v420_v2, 7  ;;  %s305_s24 = sadd.s32 1, %s810_s7  ;;  %vm1103_vm4 = vcmp.lt.s32.totalorder %v420_v2, 256 }
  0x21   : > { %s261_s27 = scalar_select %p260_p4, %s951_s12, 2  ;;  %v419_v7 = vunpack.c.0.s8 %v418_v1 }
  0x22   : > { %s836_s28 = smul.u32 12, %s1224_s13  ;;  %s1080_s25 = sld [smem:[#allocation2 + %s810_s7]] }
  0x23   : > { %s808_s29 = sshll.u32 %s261_s27, 2  ;;  %s804_s30 = sshll.u32 %s261_s27, 1  ;;  %v1088_v16 = vsub.s32 %v419_v7, %v421_v8 }
  0x24   : > { %s291_s4 = sadd.s32 %s836_s28, %s808_s29  ;;  %s835_s5 = smul.u32 6, %s1224_s13 }
  0x25   : > { %s809_s6 = sshll.u32 %s291_s4, 3  ;;  %s1090_s26 = sld [smem:[#allocation2 + %s305_s24]] }
  0x26   : > { %s1056_s10 = scalar_lea.vmem %s1208_s3, %s809_s6  ;;  %s267_s11 = sadd.s32 %s835_s5, %s804_s30 }
  0x27   : > { %298 = vst [vmem:[%s1056_s10] sm:$0xff] %v971_v3  ;;  %299 = vst [vmem:[%s1056_s10 + $0x8] sm:$0xff] %v971_v3  ;;  %s805_s13 = sshll.u32 %s267_s11, 3 }
  0x28   : > { %300 = vst [vmem:[%s1056_s10 + $0x10] sm:$0x1] %v971_v3  ;;  %301 = vst [vmem:[%s1056_s10 + $0x18] sm:$0x1] %v971_v3  ;;  %s269_s12 = scalar_lea.vmem %s1206_s1, %s805_s13  ;;  %s283_s23 = scalar_lea.vmem %s1207_s2, %s805_s13 }
  0x29   : > { %v1068_v4 = vld [vmem:[%s269_s12] sm:$0xff]  ;;  %v1070_v5 = vld [vmem:[%s269_s12 + $0x8] sm:$0xff]  ;;  %s304_s27 = sadd.f32 1e-08, %s1080_s25 }
  0x2a   : > { %v1072_v6 = vld [vmem:[%s283_s23] sm:$0xff]  ;;  %v1074_v9 = vld [vmem:[%s283_s23 + $0x8] sm:$0xff]  ;;  %v815_v10 = vmul.f32 -1.442695, %v1068_v4  ;;  %v816_v11 = vmul.f32 -1.442695, %v1070_v5 }
  0x2b   : > { %vm312_vm0 = vcmp.eq.f32.partialorder %v1072_v6, 1.0  ;;  %vm313_vm1 = vcmp.eq.f32.partialorder %v1074_v9, 1.0  ;;  %v336_v12 = vmul.f32 1.442695, %v1068_v4  ;;  %v338_v13 = vmul.f32 1.442695, %v1070_v5 }
  0x2c   : > { %890 = vpow2.f32 %v815_v10  ;;  %v1084_v14 = vsel %vm312_vm0, 1.0, %v971_v3  ;;  %v1086_v15 = vsel %vm313_vm1, 1.0, %v971_v3  ;;  %v360_v18 = vand.u32 2147483647, %v1068_v4  ;;  %s307_s28 = sadd.f32 1e-08, %s1090_s26 }
  0x2d   : > { %892 = vpow2.f32 %v816_v11  ;;  %v617_v17 = vcombine.high %v1084_v14, %v1086_v15  ;;  %v361_v19 = vand.u32 2147483647, %v1070_v5  ;;  %vm318_vm2 = vcmp.eq.f32.partialorder %v1072_v6, 0.0 }
  0x2e   : > { %894 = vpow2.f32 %v336_v12  ;;  %vm319_vm3 = vcmp.eq.f32.partialorder %v1074_v9, 0.0  ;;  %v362_v21 = vsub.f32 0.0, %v360_v18  ;;  %v1099_v23 = vsel %vm318_vm2, 1.0, %v971_v3  ;;  %v829_v26 = vld [vmem:[%s1056_s10 + $0x7] ss:$8 sm:$0x3] }
  0x2f   : > { %896 = vpow2.f32 %v338_v13  ;;  %v624_v20 = vrot.slane %v617_v17, %v1088_v16  ;;  %v363_v22 = vsub.f32 0.0, %v361_v19  ;;  %v1101_v24 = vsel %vm319_vm3, 1.0, %v971_v3  ;;  %v831_v33 = vld [vmem:[%s1056_s10 + $0x10] ss:$8 sm:$0x3] }
  0x30   : > { %v640_v28 = vcombine.high %v1099_v23, %v1101_v24  ;;  %v364_v29 = vmul.f32 1.442695, %v362_v21  ;;  %v340_v36 = vstv %s304_s27  ;;  %v347_v37 = vstv %s307_s28 }
  0x31   : > { %v631_v27 = vrot.slane %v624_v20, %v1088_v16  ;;  %v366_v30 = vmul.f32 1.442695, %v363_v22  ;;  %v399_v7 = vadd.f32 1e-08, %v1072_v6  ;;  %v400_v11 = vadd.f32 1e-08, %v1074_v9 }
  0x32   : > { %v647_v32 = vrot.slane %v640_v28, %v1088_v16  ;;  %898 = vpow2.f32 %v364_v29 }
  0x33   : > { %v633_v31 = vadd.f32 %v829_v26, %v631_v27  ;;  %900 = vpow2.f32 %v366_v30 }
  0x34   : > { %v654_v34 = vrot.slane %v647_v32, %v1088_v16 }
  0x35   : > { %830 = vst.msk [vmem:[%s1056_s10 + $0x7] ss:$8 sm:$0x3] %vm1103_vm4, %v633_v31  ;;  %v356_v31 = vmul.f32 %v1072_v6, %v1068_v4 }
  0x36   : > { %v656_v38 = vadd.f32 %v831_v33, %v654_v34  ;;  %v819_v33 = vld [vmem:[%s1056_s10 + $0x2] ss:$8 sm:$0x3] }
  0x38   : > { %832 = vst.msk [vmem:[%s1056_s10 + $0x10] ss:$8 sm:$0x3] %vm1103_vm4, %v656_v38 }
  0x39   : > { %v891_v35 = vpop.eup %890 }
  0x3a   : > { %v893_v39 = vpop.eup %892  ;;  %v330_v40 = vadd.f32 1.0, %v891_v35 }
  0x3b   : > { %v895_v41 = vpop.eup %894  ;;  %v331_v42 = vadd.f32 1.0, %v893_v39  ;;  %v821_v39 = vld [vmem:[%s1056_s10 + $0x3] ss:$8 sm:$0x3] }
  0x3c   : > { %v897_v43 = vpop.eup %896  ;;  %902 = vrcp.f32 %v330_v40  ;;  %v341_v44 = vmul.f32 %v895_v41, %v340_v36  ;;  %v348_v45 = vmul.f32 %v895_v41, %v347_v37  ;;  %v355_v40 = vmax.f32 %v1070_v5, 0.0 }
  0x3d   : > { %904 = vrcp.f32 %v331_v42  ;;  %v342_v46 = vmul.f32 %v897_v43, %v340_v36  ;;  %v349_v47 = vmul.f32 %v897_v43, %v347_v37  ;;  %v354_v36 = vmax.f32 %v1068_v4, 0.0 }
  0x3e   : > { %v343_v48 = vmax.f32 %v341_v44, 0.0001  ;;  %v350_v49 = vmax.f32 %v348_v45, 0.0001  ;;  %v357_v41 = vmul.f32 %v1074_v9, %v1070_v5 }
  0x3f   : > { %v344_v50 = vmax.f32 %v342_v46, 0.0001  ;;  %v351_v51 = vmax.f32 %v349_v47, 0.0001  ;;  %v899_v58 = vpop.eup %898  ;;  %v358_v5 = vsub.f32 %v354_v36, %v356_v31 }
  0x40   : > { %v345_v52 = vmin.f32 %v343_v48, 10000.0  ;;  %v352_v53 = vmin.f32 %v350_v49, 10000.0  ;;  %v901_v61 = vpop.eup %900  ;;  %v368_v0 = vadd.f32 1.0, %v899_v58  ;;  %v413_v58 = vld [vmem:[%s1056_s10] ss:$8 sm:$0x3] }
  0x41   : > { %v346_v54 = vmin.f32 %v344_v50, 10000.0  ;;  %v353_v55 = vmin.f32 %v351_v51, 10000.0  ;;  %v369_v3 = vadd.f32 1.0, %v901_v61 }
  0x42   : > { %v468_v56 = vsub.f32 %v345_v52, %v1072_v6  ;;  %v503_v57 = vsub.f32 %v352_v53, %v1072_v6  ;;  %906 = vlog2.f32 %v368_v0  ;;  %v359_v52 = vsub.f32 %v355_v40, %v357_v41 }
  0x43   : > { %v469_v59 = vsub.f32 %v346_v54, %v1074_v9  ;;  %v504_v60 = vsub.f32 %v353_v55, %v1074_v9  ;;  %908 = vlog2.f32 %v369_v3 }
  0x44   : > { %v470_v62 = vmul.f32 %v468_v56, %v468_v56  ;;  %v505_v63 = vmul.f32 %v503_v57, %v503_v57 }
  0x45   : > { %v471_v1 = vmul.f32 %v469_v59, %v469_v59  ;;  %v506_v2 = vmul.f32 %v504_v60, %v504_v60  ;;  %v817_v59 = vld [vmem:[%s1056_s10 + $0x1] ss:$8 sm:$0x3] }
  0x46   : > { %v474_v8 = vrot.slane %v470_v62, 6  ;;  %v509_v10 = vrot.slane %v505_v63, 7 }
  0x47   : > { %v475_v12 = vrot.slane %v471_v1, 6  ;;  %v510_v13 = vrot.slane %v506_v2, 7 }
  0x48   : > { %v478_v17 = vmul.f32 %v1084_v14, %v474_v8  ;;  %v513_v18 = vmul.f32 %v1084_v14, %v509_v10 }
  0x49   : > { %v903_v19 = vpop.eup %902  ;;  %v479_v20 = vmul.f32 %v1086_v15, %v475_v12  ;;  %v514_v21 = vmul.f32 %v1086_v15, %v510_v13 }
  0x4a   : > { %v905_v22 = vpop.eup %904  ;;  %v401_v26 = vsub.f32 %v903_v19, %v399_v7 }
  0x4b   : > { %v402_v27 = vsub.f32 %v905_v22, %v400_v11  ;;  %v484_v28 = vcombine.high %v478_v17, %v479_v20  ;;  %v519_v29 = vcombine.high %v513_v18, %v514_v21 }
  0x4c   : > { %v403_v30 = vmul.f32 %v401_v26, %v401_v26 }
  0x4d   : > { %v404_v32 = vmul.f32 %v402_v27, %v402_v27  ;;  %v491_v34 = vrot.slane %v484_v28, %v1088_v16  ;;  %v526_v35 = vrot.slane %v519_v29, %v1088_v16  ;;  %v823_v28 = vld [vmem:[%s1056_s10 + $0x4] ss:$8 sm:$0x3]  ;;  %v825_v29 = vld [vmem:[%s1056_s10 + $0x5] ss:$8 sm:$0x3] }
  0x4e   : > { %v407_v37 = vrot.slane %v403_v30, 4  ;;  %v439_v38 = vrot.slane %v403_v30, 5 }
  0x4f   : > { %v408_v42 = vrot.slane %v404_v32, 4  ;;  %v440_v6 = vrot.slane %v404_v32, 5  ;;  %v498_v43 = vrot.slane %v491_v34, %v1088_v16  ;;  %v533_v44 = vrot.slane %v526_v35, %v1088_v16  ;;  %v907_v9 = vpop.eup %906 }
  0x50   : > { %v411_v45 = vmul.f32 %v1084_v14, %v407_v37  ;;  %v443_v4 = vmul.f32 %v1084_v14, %v439_v38  ;;  %v909_v53 = vpop.eup %908  ;;  %v371_v54 = vmul.f32 0.6931472, %v907_v9 }
  0x51   : > { %v412_v46 = vmul.f32 %v1086_v15, %v408_v42  ;;  %v444_v47 = vmul.f32 %v1086_v15, %v440_v6  ;;  %v500_v48 = vadd.f32 %v819_v33, %v498_v43  ;;  %v535_v49 = vadd.f32 %v821_v39, %v533_v44 }
  0x52   : > { %v373_v57 = vmul.f32 0.6931472, %v909_v53  ;;  %v374_v60 = vadd.f32 %v371_v54, %v358_v5 }
  0x53   : > { %v416_v50 = vcombine.high %v411_v45, %v412_v46  ;;  %v449_v51 = vcombine.high %v443_v4, %v444_v47  ;;  %820 = vst.msk [vmem:[%s1056_s10 + $0x2] ss:$8 sm:$0x3] %vm1103_vm4, %v500_v48  ;;  %822 = vst.msk [vmem:[%s1056_s10 + $0x3] ss:$8 sm:$0x3] %vm1103_vm4, %v535_v49 }
  0x54   : > { %v375_v63 = vadd.f32 %v373_v57, %v359_v52  ;;  %v376_v0 = vmin.f32 %v374_v60, 100.0  ;;  %v827_v45 = vld [vmem:[%s1056_s10 + $0x6] ss:$8 sm:$0x3] }
  0x55   : > { %v423_v55 = vrot.slane %v416_v50, %v1088_v16  ;;  %v456_v56 = vrot.slane %v449_v51, %v1088_v16 }
  0x56   : > { %v377_v3 = vmin.f32 %v375_v63, 100.0  ;;  %v538_v7 = vmul.f32 %v1084_v14, %v376_v0  ;;  %v563_v8 = vmul.f32 %v1099_v23, %v376_v0  ;;  %v380_v10 = vrot.slane %v376_v0, 5 }
  0x57   : > { %v430_v61 = vrot.slane %v423_v55, %v1088_v16  ;;  %v463_v62 = vrot.slane %v456_v56, %v1088_v16 }
  0x58   : > { %v539_v11 = vmul.f32 %v1086_v15, %v377_v3  ;;  %v564_v12 = vmul.f32 %v1101_v24, %v377_v3  ;;  %v381_v13 = vrot.slane %v377_v3, 5  ;;  %v385_v17 = vsel %vm384_vm5, %v380_v10, 0.0 }
  0x59   : > { %v432_v1 = vadd.f32 %v430_v61, %v413_v58  ;;  %v465_v2 = vadd.f32 %v817_v59, %v463_v62  ;;  %v386_v20 = vrot.slane %v385_v17, 4 }
  0x5a   : > { %v544_v18 = vcombine.high %v538_v7, %v539_v11  ;;  %v569_v19 = vcombine.high %v563_v8, %v564_v12  ;;  %v392_v21 = vsel %vm384_vm5, %v381_v13, 0.0 }
  0x5b   : > { %437 = vst.msk [vmem:[%s1056_s10] ss:$8 sm:$0x3] %vm1103_vm4, %v432_v1  ;;  %818 = vst.msk [vmem:[%s1056_s10 + $0x1] ss:$8 sm:$0x3] %vm1103_vm4, %v465_v2  ;;  %v387_v27 = vadd.f32 %v386_v20, %v385_v17 }
  0x5c   : > { %v393_v23 = vrot.slane %v392_v21, 4  ;;  %v551_v22 = vrot.slane %v544_v18, %v1088_v16  ;;  %v576_v26 = vrot.slane %v569_v19, %v1088_v16 }
  0x5d   : > { %v388_v32 = vrot.slane %v387_v27, 2 }
  0x5e   : > { %v394_v30 = vadd.f32 %v393_v23, %v392_v21  ;;  %v558_v31 = vrot.slane %v551_v22, %v1088_v16  ;;  %v583_v24 = vrot.slane %v576_v26, %v1088_v16 }
  0x5f   : > { %v389_v36 = vadd.f32 %v388_v32, %v387_v27 }
  0x60   : > { %v395_v33 = vrot.slane %v394_v30, 2  ;;  %v560_v34 = vadd.f32 %v823_v28, %v558_v31  ;;  %v585_v35 = vadd.f32 %v825_v29, %v583_v24 }
  0x61   : > { %v390_v38 = vrot.slane %v389_v36, 1 }
  0x62   : > { %v396_v37 = vadd.f32 %v395_v33, %v394_v30  ;;  %824 = vst.msk [vmem:[%s1056_s10 + $0x4] ss:$8 sm:$0x3] %vm1103_vm4, %v560_v34  ;;  %826 = vst.msk [vmem:[%s1056_s10 + $0x5] ss:$8 sm:$0x3] %vm1103_vm4, %v585_v35 }
  0x63   : > { %v391_v40 = vadd.f32 %v390_v38, %v389_v36 }
  0x64   : > { %v397_v39 = vrot.slane %v396_v37, 1 }
  0x65   : > { %v588_v42 = vmul.f32 %v1084_v14, %v391_v40 }
  0x66   : > { %v398_v41 = vadd.f32 %v397_v39, %v396_v37 }
  0x68   : > { %v589_v6 = vmul.f32 %v1086_v15, %v398_v41 }
  0x6a   : > { %v594_v43 = vcombine.high %v588_v42, %v589_v6 }
  0x6c   : > { %v601_v44 = vrot.slane %v594_v43, %v1088_v16 }
  0x6e   : > { %v608_v4 = vrot.slane %v601_v44, %v1088_v16 }
  0x70   : > { %v610_v46 = vadd.f32 %v827_v45, %v608_v4 }
  0x72   : > { %828 = vst.msk [vmem:[%s1056_s10 + $0x6] ss:$8 sm:$0x3] %vm1103_vm4, %v610_v46 }
  0x73 PF: > { %s14_s16 = sadd.s32 1, %s967_s16   ;;  %s1213_s12 = smov %s959_s14 }
  0x74   : > { %p11_p3 = scmp.ge.s32.totalorder %s14_s16, 8   ;;  %s1214_s13 = smov %s963_s15 }
  0x75   : > { %s1215_s14 = smov %s1218_s18  ;;  %s1216_s15 = smov %s1222_s19 }
  0x76   :  { %13 = sbr.rel (!%p11_p3) target bundleno = 3 (0x3), region = 82 }
  0x7b   :  { %688 = vsyncpa [#allocation3], 1 }
  0x7c   :  { %690 = vsyncpa [#allocation3 + $0x1], 1 }

</bundles_post_ra>
